<compile_context>
chip_gen: v7x
topology: tpu7x:2x2x1
jax: 0.10.0
libtpu: 0.0.40
codegen_flags: <defaults>
</compile_context>

<pallas_src>
import jax
import jax.numpy as jnp
from jax.experimental import pallas as pl
from jax.experimental.pallas import tpu as pltpu

X0 = 0.5  # deterministic stand-in for args.x0 used in Toy_x.__init__

_MIB = 1 << 20

# Per-generation tuning:
#   block_bytes : target bytes per y block (amortizes ~0.35 us/grid-step overhead)
#   vmem_limit  : scoped-VMEM limit to request (working set ~ 4x block + param)
#   vmem_cap    : never request more than this (stay inside physical VMEM)
#   n_tc        : TensorCores per chip (keep >=2 grid steps when n_tc > 1)
_GEN_CFG = {
    "v7x": dict(block_bytes=8 * _MIB, vmem_limit=40 * _MIB, vmem_cap=56 * _MIB, n_tc=2),
    "v6e": dict(block_bytes=8 * _MIB, vmem_limit=80 * _MIB, vmem_cap=112 * _MIB, n_tc=1),
    "v5e": dict(block_bytes=4 * _MIB, vmem_limit=24 * _MIB, vmem_cap=112 * _MIB, n_tc=1),
    "unknown": dict(block_bytes=2 * _MIB, vmem_limit=32 * _MIB, vmem_cap=64 * _MIB, n_tc=1),
}


def _tpu_generation():
    try:
        kind = jax.devices()[0].device_kind.lower()
    except Exception:
        return "unknown"
    if "v7" in kind:
        return "v7x"
    if "v6" in kind:
        return "v6e"
    if "v5" in kind:
        return "v5e"
    return "unknown"


def _toy_x_kernel(x_ref, y_ref, o_ref):
    # x_ref: (1, D) parameter row, resident across grid steps (constant index_map)
    # y_ref / o_ref: (TB, D) batch tile
    x = x_ref[...]
    o_ref[...] = x + x * y_ref[...]        # broadcast over batch rows (VPU, DMA-bound)


def toy_x_forward(toy_x, y, block_rows=None, fold_lanes=True):
    """out = toy_x + toy_x * y  (elementwise, toy_x broadcast over the batch)."""
    cfg = _GEN_CFG[_tpu_generation()]

    y = jnp.asarray(y, jnp.float32)
    squeeze = (y.ndim == 1)
    if squeeze:
        y = y[None, :]
    B, d = y.shape
    x2d = jnp.asarray(toy_x, jnp.float32).reshape(1, d)

    # --- Lane density: pad hidden dim to a multiple of 128 (unmasked stores). ---
    d_pad = ((d + 127) // 128) * 128
    if d_pad != d:
        y = jnp.pad(y, ((0, 0), (0, d_pad - d)))
        x2d = jnp.pad(x2d, ((0, 0), (0, d_pad - d)))

    # --- Skinny-d: fold batch rows into the lane axis (pure layout plumbing). ---
    # y.reshape(B//R, R*d) keeps the HBM layout identical; the tiled parameter
    # preserves broadcast semantics (x_tiled[r*d + j] = x[j]).
    fold = 1
    if fold_lanes and block_rows is None and d_pad < 2048 and B > 1:
        rmax = min(B, 8192 // d_pad)
        for r in range(1, rmax + 1):
            if B % r == 0:
                fold = r
    if fold > 1:
        y = y.reshape(B // fold, fold * d_pad)
        x2d = jnp.tile(x2d, (1, fold))
    Bf, Df = y.shape

    # --- Pick the batch-tile size (rows per block). ---
    if block_rows is not None:
        tb = int(block_rows)
    else:
        tb = max(1, cfg["block_bytes"] // (Df * 4))
    tb = max(1, min(tb, Bf))
    if tb != Bf:
        # Sublane dim must be a multiple of 8 (or the full extent).
        tb = max(8, (tb // 8) * 8)
        tb = min(tb, Bf)
    # v7x: keep >= 2 grid steps so the "parallel" axis can shard across 2 TCs.
    if cfg["n_tc"] > 1 and Bf >= 16 and tb > Bf // 2:
        half = ((Bf // 2) // 8) * 8
        if half >= 8:
            tb = min(tb, half)

    num_blocks = pl.cdiv(Bf, tb)

    # --- Scoped-VMEM budget for the double-buffered working set. ---
    block_bytes = tb * Df * 4
    working = 4 * block_bytes + 2 * Df * 4 + 2 * _MIB      # 2x(y+out) bufs + param + slack
    vmem_limit = min(max(cfg["vmem_limit"], int(working * 1.25)), cfg["vmem_cap"])

    out = pl.pallas_call(
        _toy_x_kernel,
        out_shape=jax.ShapeDtypeStruct((Bf, Df), jnp.float32),
        grid_spec=pltpu.PrefetchScalarGridSpec(
            num_scalar_prefetch=0,
            grid=(num_blocks,),
            in_specs=[
                # Parameter: one (1, Df) block, constant index_map -> resident in VMEM.
                pl.BlockSpec((1, Df), lambda i: (0, 0)),
                # y: tiled over the batch axis, auto double-buffered.
                pl.BlockSpec((tb, Df), lambda i: (i, 0)),
            ],
            out_specs=pl.BlockSpec((tb, Df), lambda i: (i, 0)),
        ),
        compiler_params=pltpu.CompilerParams(
            dimension_semantics=("parallel",),
            vmem_limit_bytes=vmem_limit,
        ),
    )(x2d, y)

    # Undo the layout plumbing (zero-cost reshapes / a slice for padded d).
    if fold > 1:
        out = out.reshape(B, d_pad)
    if d_pad != d:
        out = out[:, :d]
    if squeeze:
        out = out[0]
    return out


def toy_x_forward_explicit_x(x, y, block_rows=None, fold_lanes=True):
    """The `x is not None` branch of Toy_x.forward: out = x + x * y."""
    return toy_x_forward(x, y, block_rows=block_rows, fold_lanes=fold_lanes)


if __name__ == "__main__":
    # Small shapes consistent with the module: d = hidden size, batch of ys.
    B, d = 32, 128
    key = jax.random.PRNGKey(0)
    k_y, k_y2 = jax.random.split(key)
    y = jax.random.normal(k_y, (B, d), dtype=jnp.float32)

    # Parameter init: toy_x = x0 * ones(d), as in Toy_x.__init__
    toy_x = X0 * jnp.ones((d,), dtype=jnp.float32)
    ref = toy_x[None, :] + toy_x[None, :] * y

    # 1) Default path: generation-aware block size + lane folding for skinny d.
    out = toy_x_forward(toy_x, y)
    jax.block_until_ready(out)
    assert out.shape == (B, d)
    assert jnp.allclose(out, ref, atol=1e-6), "mismatch vs reference (default/fold)"

    # 2) Forced small tile, folding disabled -> exercises the multi-step pipelined grid.
    out_tiled = toy_x_forward(toy_x, y, block_rows=8, fold_lanes=False)
    jax.block_until_ready(out_tiled)
    assert jnp.allclose(out_tiled, ref, atol=1e-6), "mismatch vs reference (tiled)"

    # 3) Hidden size not a multiple of 128 -> padded, lane-dense path.
    d2 = 96
    y2 = jax.random.normal(k_y2, (B, d2), dtype=jnp.float32)
    x2 = X0 * jnp.ones((d2,), dtype=jnp.float32)
    out2 = toy_x_forward(x2, y2)
    jax.block_until_ready(out2)
    ref2 = x2[None, :] + x2[None, :] * y2
    assert jnp.allclose(out2, ref2, atol=1e-6), "mismatch vs reference (padded d)"

    # 4) Explicit-x branch (x is not None in the PyTorch forward).
    x_alt = 2.0 * toy_x
    out3 = toy_x_forward_explicit_x(x_alt, y, block_rows=8, fold_lanes=False)
    jax.block_until_ready(out3)
    ref3 = x_alt[None, :] + x_alt[None, :] * y
    assert jnp.allclose(out3, ref3, atol=1e-6), "mismatch vs reference (x branch)"

    print("KERNEL_OK")
</pallas_src>

<mosaic_0001>
module attributes {stable_mosaic.version = 11 : i64} {
  func.func @_toy_x_kernel(%arg0: i32, %arg1: memref<1x4096xf32, #tpu.memory_space<vmem>>, %arg2: memref<1x4096xf32, #tpu.memory_space<vmem>>, %arg3: memref<1x4096xf32, #tpu.memory_space<vmem>>) attributes {dimension_semantics = [#tpu.dimension_semantics<parallel>], iteration_bounds = array<i64: 1>, scalar_prefetch = 0 : i64, scratch_operands = 0 : i64, tpu.core_type = #tpu.core_type<tc>, window_params = [{pipeline_mode = #tpu.pipeline_mode<synchronous>, transform_indices = @transform_0, window_bounds = array<i64: 1, 4096>}, {transform_indices = @transform_1, window_bounds = array<i64: 1, 4096>}, {transform_indices = @transform_2, window_bounds = array<i64: 1, 4096>}]} {
    %c0 = arith.constant 0 : index
    %c0_0 = arith.constant 0 : index
    %0 = vector.load %arg1[%c0, %c0_0] : memref<1x4096xf32, #tpu.memory_space<vmem>>, vector<1x4096xf32>
    %c0_1 = arith.constant 0 : index
    %c0_2 = arith.constant 0 : index
    %1 = vector.load %arg2[%c0_1, %c0_2] : memref<1x4096xf32, #tpu.memory_space<vmem>>, vector<1x4096xf32>
    %2 = arith.mulf %0, %1 : vector<1x4096xf32>
    %3 = arith.addf %0, %2 : vector<1x4096xf32>
    %c0_3 = arith.constant 0 : index
    %c0_4 = arith.constant 0 : index
    %4 = vector.load %arg3[%c0_3, %c0_4] : memref<1x4096xf32, #tpu.memory_space<vmem>>, vector<1x4096xf32>
    tpu.vector_store %arg3[%c0_3, %c0_4], %3 {strides = array<i32>} : memref<1x4096xf32, #tpu.memory_space<vmem>>, vector<1x4096xf32>,
    return
  }
  func.func @transform_0(%arg0: i32) -> (i32, i32) {
    %c0_i32 = arith.constant 0 : i32
    %c0_i32_0 = arith.constant 0 : i32
    %c0_i32_1 = arith.constant 0 : i32
    return %c0_i32, %c0_i32_0 : i32, i32
  }
  func.func @transform_1(%arg0: i32) -> (i32, i32) {
    %c0_i32 = arith.constant 0 : i32
    %c0_i32_0 = arith.constant 0 : i32
    return %arg0, %c0_i32 : i32, i32
  }
  func.func @transform_2(%arg0: i32) -> (i32, i32) {
    %c0_i32 = arith.constant 0 : i32
    %c0_i32_0 = arith.constant 0 : i32
    return %arg0, %c0_i32 : i32, i32
  }
}

</mosaic_0001>

<bundles_post_ra>
// kernel: tpu_custom_call.1
= control target key start
LH: loop header
LB: loop body
LE: loop exit
PB: predicated region body
PF: predicated region fallthrough
CT: control target
= control target key end

     0   :  { %7 = vsyncpa [#allocation3], 0  ;;  %s201_s0 = inlined_call_operand.hbm [shape: f32[1,4096], index: 0, kind: input, shape index: {}]   ;;  %s202_s1 = inlined_call_operand.hbm [shape: f32[1,4096], index: 1, kind: input, shape index: {}]   ;;  %s203_s2 = inlined_call_operand.hbm [shape: f32[1,4096], index: 2, kind: output, shape index: {}]  }
   0x1   :  { %8 = vsyncpa [#allocation6], 0 }
   0x2   :  { %9 = vsyncpa [#allocation4], 0  ;;  %s147_s9 = smov [#allocation2]   ;;  %s148_s11 = smov [#allocation5]  }
   0x3   :  { %s16_s10 = sshll.u32 %s147_s9, 4  ;;  %s26_s12 = sshll.u32 %s148_s11, 4  ;;  %s17_s10 = int_to_ptr.vmem [resolvable:$true] %s16_s10  ;;  %s27_s12 = int_to_ptr.vmem [resolvable:$true] %s26_s12 }
   0x4   :  { %s75_s15 = scalar_lea.hbm %s201_s0, 512 }
   0x5   :  { %p76_p0 = scmp.ne.s32.totalorder %s201_s0, %s75_s15  ;;  %p79_p1 = scmp.lt.u32.totalorder %s75_s15, %s201_s0 }
   0x7   :  { %p81_p2 = pnand %p79_p1, %p76_p0 }
   0x9   :  { %84 = shalt.err (!%p81_p2)
}
   0xa   :  { %s85_s20 = scalar_lea.vmem %s17_s10, 512  ;;  %p90_p4 = scmp.lt.s32.totalorder %s17_s10, %s17_s10 }
   0xb   :  { %p86_p3 = scmp.ne.s32.totalorder %s17_s10, %s85_s20  ;;  %p91_p5 = scmp.lt.s32.totalorder %s85_s20, %s85_s20 }
   0xd   :  { %p92_p6 = por %p91_p5, %p90_p4 }
   0xf   :  { %p93_p7 = pnand %p92_p6, %p86_p3 }
  0x11   :  { %96 = shalt.err (!%p93_p7)
}
  0x12   :  { %19 = dma.hbm_to_vmem [thread:$0]  %s201_s0, 512, %s17_s10, [#allocation3]  }
  0x13   :  { %s97_s25 = scalar_lea.hbm %s202_s1, 512 }
  0x14   :  { %p98_p8 = scmp.ne.s32.totalorder %s202_s1, %s97_s25  ;;  %p101_p9 = scmp.lt.u32.totalorder %s97_s25, %s202_s1 }
  0x16   :  { %p103_p10 = pnand %p101_p9, %p98_p8 }
  0x18   :  { %106 = shalt.err (!%p103_p10)
}
  0x19   :  { %s107_s30 = scalar_lea.vmem %s27_s12, 512  ;;  %p112_p12 = scmp.lt.s32.totalorder %s27_s12, %s27_s12 }
  0x1a   :  { %p108_p11 = scmp.ne.s32.totalorder %s27_s12, %s107_s30  ;;  %p113_p13 = scmp.lt.s32.totalorder %s107_s30, %s107_s30 }
  0x1c   :  { %p114_p0 = por %p113_p13, %p112_p12 }
  0x1e   :  { %p115_p1 = pnand %p114_p0, %p108_p11 }
  0x20   :  { %118 = shalt.err (!%p115_p1)
}
  0x21   :  { %29 = dma.hbm_to_vmem [thread:$0]  %s202_s1, 512, %s27_s12, [#allocation6]  }
  0x22   :  { %141 = dma.done.wait [#allocation3], 512  }
  0x23   :  { %142 = vsyncadd [#allocation3], 4294966784 }
  0x24   :  { %143 = dma.done.wait [#allocation6], 512  }
  0x25   :  { %144 = vsyncadd [#allocation6], 4294966784  ;;  %v36_v0 = vld [vmem:[#allocation2] sm:$0xff]  ;;  %v37_v2 = vld [vmem:[#allocation2 + $0x8] sm:$0xff]  ;;  %s149_s4 = smov [#allocation7]  }
  0x26   :  { %v40_v1 = vld [vmem:[#allocation5] sm:$0xff]  ;;  %v41_v4 = vld [vmem:[#allocation5 + $0x8] sm:$0xff]  ;;  %v38_v5 = vld [vmem:[#allocation2 + $0x10] sm:$0xff]  ;;  %s62_s5 = sshll.u32 %s149_s4, 4  ;;  %s63_s5 = int_to_ptr.vmem [resolvable:$true] %s62_s5 }
  0x27   :  { %v44_v3 = vmul.f32 %v40_v1, %v36_v0  ;;  %v42_v6 = vld [vmem:[#allocation5 + $0x10] sm:$0xff]  ;;  %v45_v7 = vmul.f32 %v41_v4, %v37_v2  ;;  %v39_v9 = vld [vmem:[#allocation2 + $0x18] sm:$0xff]  ;;  %s119_s1 = scalar_lea.vmem %s63_s5, 512  ;;  %p124_p3 = scmp.lt.s32.totalorder %s63_s5, %s63_s5 }
  0x28   :  { %v46_v8 = vmul.f32 %v42_v6, %v38_v5  ;;  %v43_v10 = vld [vmem:[#allocation5 + $0x18] sm:$0xff]  ;;  %p120_p2 = scmp.ne.s32.totalorder %s63_s5, %s119_s1  ;;  %p125_p4 = scmp.lt.s32.totalorder %s119_s1, %s119_s1 }
  0x29   :  { %v48_v11 = vadd.f32 %v44_v3, %v36_v0  ;;  %v47_v12 = vmul.f32 %v43_v10, %v39_v9  ;;  %v49_v13 = vadd.f32 %v45_v7, %v37_v2 }
  0x2a   :  { %v50_v14 = vadd.f32 %v46_v8, %v38_v5  ;;  %p126_p5 = por %p125_p4, %p124_p3 }
  0x2b   :  { %52 = vst [vmem:[#allocation7] sm:$0xff] %v48_v11  ;;  %v51_v15 = vadd.f32 %v47_v12, %v39_v9  ;;  %53 = vst [vmem:[#allocation7 + $0x8] sm:$0xff] %v49_v13 }
  0x2c   :  { %54 = vst [vmem:[#allocation7 + $0x10] sm:$0xff] %v50_v14  ;;  %p127_p6 = pnand %p126_p5, %p120_p2 }
  0x2d   :  { %55 = vst [vmem:[#allocation7 + $0x18] sm:$0xff] %v51_v15 }
  0x2e   :  { %130 = shalt.err (!%p127_p6)
}
  0x2f   :  { %s131_s8 = scalar_lea.hbm %s203_s2, 512 }
  0x30   :  { %p132_p7 = scmp.ne.s32.totalorder %s203_s2, %s131_s8  ;;  %p135_p8 = scmp.lt.u32.totalorder %s131_s8, %s203_s2 }
  0x32   :  { %p137_p9 = pnand %p135_p8, %p132_p7 }
  0x34   :  { %140 = shalt.err (!%p137_p9)
}
  0x35   :  { %65 = dma.vmem_to_hbm [thread:$0]  %s63_s5, 512, %s203_s2, [#allocation4]  }
  0x36   :  { %145 = dma.done.wait [#allocation4], 512  }
  0x37   :  { %146 = vsyncadd [#allocation4], 4294966784 }
  0x38   :  { %69 = vsyncpa [#allocation3], 1 }
  0x39   :  { %70 = vsyncpa [#allocation6], 1 }
  0x3a   :  { %71 = vsyncpa [#allocation4], 1 }

</bundles_post_ra>
